<compile_context>
chip_gen: v7x
topology: tpu7x:2x2x1
jax: 0.10.0
libtpu: 0.0.40
codegen_flags: <defaults>
</compile_context>

<pallas_src>
import functools

import jax
import jax.numpy as jnp
from jax.experimental import pallas as pl
from jax.experimental.pallas import tpu as pltpu

H_PAD = 128        # hidden dim padded 100 -> 128 (ReLU(0)=0 => bit-identical)
K_PAD = 128        # fc3 / softmax width padded 3 -> 128 for lane-dense compute
W_OUT = 8          # softmax lanes actually written back to HBM (>= K)
NEG_BIG = -1e30    # bias pad so padded logit columns softmax to exactly 0
MAX_TILE = 1024    # batch-tile cap (per-step VMEM stays far under budget)


def _round_up(n, m):
    return ((n + m - 1) // m) * m


def _net_kernel(x_ref, iv_ref, w1_ref, b1_ref, w2_ref, b2_ref, w3_ref, b3_ref,
                pred_ref, weight_ref, *, num_members, member_dim):
    x = x_ref[...]                                   # (tb, H_in) f32

    # fc1 + relu (hidden padded to 128 -> dense vregs / MXU tiles)
    h = jnp.dot(x, w1_ref[...], preferred_element_type=jnp.float32) + b1_ref[...]
    h = jnp.maximum(h, 0.0)                          # (tb, 128)

    # fc2 + relu
    h = jnp.dot(h, w2_ref[...], preferred_element_type=jnp.float32) + b2_ref[...]
    h = jnp.maximum(h, 0.0)                          # (tb, 128)

    # fc3 -- width padded to 128; padded columns carry bias -1e30 so they
    # contribute exp(...) == 0 and the real K probabilities are unchanged.
    logits = jnp.dot(h, w3_ref[...], preferred_element_type=jnp.float32) + b3_ref[...]

    # exact softmax over the padded, lane-dense last dim (kernel is HBM /
    # step-overhead bound, so the exact reciprocal is effectively free)
    m = jnp.max(logits, axis=-1, keepdims=True)
    e = jnp.exp(logits - m)
    w = e / jnp.sum(e, axis=-1, keepdims=True)       # (tb, 128); cols >= K are 0

    # TODO(synk): the original forward prints weight[0] with probability 0.02
    # (host-side random.random() side effect); intentionally not reproduced.

    # weighted sum over ensemble members: members are flattened on the lane
    # axis of iv (tb, K*D); unrolled VPU FMA over static lane slices.
    iv = iv_ref[...]
    pred = w[:, 0:1] * iv[:, 0:member_dim]
    for k in range(1, num_members):
        pred = pred + w[:, k:k + 1] * iv[:, k * member_dim:(k + 1) * member_dim]

    pred_ref[...] = pred.astype(pred_ref.dtype)
    # Only the first W_OUT lanes of the padded softmax go back to HBM
    # (16x fewer bytes than storing the full 128-wide padded tile).
    weight_ref[...] = w[:, :W_OUT].astype(weight_ref.dtype)


def prepare_params(params):
    """Pad hidden 100->128 and fc3 width 3->128. Call ONCE at setup (hoisted
    out of the per-call path). Results are bit-identical to the unpadded net:
    ReLU(0)=0 for the hidden pads; exp(-1e30)=0 for the softmax pads."""
    w1, b1, w2, b2, w3, b3 = params
    h_in, h = w1.shape
    k = w3.shape[1]
    f32 = jnp.float32
    w1p = jnp.zeros((h_in, H_PAD), f32).at[:, :h].set(w1.astype(f32))
    b1p = jnp.zeros((1, H_PAD), f32).at[:, :h].set(b1.astype(f32))
    w2p = jnp.zeros((H_PAD, H_PAD), f32).at[:h, :h].set(w2.astype(f32))
    b2p = jnp.zeros((1, H_PAD), f32).at[:, :h].set(b2.astype(f32))
    w3p = jnp.zeros((H_PAD, K_PAD), f32).at[:h, :k].set(w3.astype(f32))
    b3p = jnp.full((1, K_PAD), NEG_BIG, f32).at[:, :k].set(b3.astype(f32))
    return (w1p, b1p, w2p, b2p, w3p, b3p)


def net_forward(input_vecs, x, padded_params):
    """input_vecs: (B, K, D) f32, x: (B, H_in) f32, padded_params from
    prepare_params(). Returns (pred_dist (B, D), weight (B, K, 1))."""
    B, K, D = input_vecs.shape
    h_in = x.shape[1]
    assert K <= W_OUT

    # Free row-major reshape (no copy): members flattened onto the lane axis.
    iv2 = input_vecs.astype(jnp.float32).reshape(B, K * D)
    x32 = x.astype(jnp.float32)

    # Batch tiling: multiple of 8 (sublane), capped at MAX_TILE; once B is
    # moderate, size tiles so there are >= 2 grid steps -- the "parallel"
    # axis then shards across both v7x TensorCores and pipelines DMA/compute.
    if B <= 16:
        tb = max(8, _round_up(B, 8))
    else:
        tb = min(_round_up(pl.cdiv(B, 2), 8), MAX_TILE)
    nb = pl.cdiv(B, tb)   # partial last tile handled by Pallas boundary blocks

    vmem_full = pl.BlockSpec(memory_space=pltpu.MemorySpace.VMEM)
    kernel = functools.partial(_net_kernel, num_members=K, member_dim=D)

    # TODO(synk): if many Net instances form an ensemble, stack their params
    # and add a member grid axis here to amortize one pallas_call over all.
    pred, weight = pl.pallas_call(
        kernel,
        out_shape=(
            jax.ShapeDtypeStruct((B, D), jnp.float32),
            jax.ShapeDtypeStruct((B, W_OUT), jnp.float32),
        ),
        grid=(nb,),
        in_specs=[
            pl.BlockSpec((tb, h_in), lambda i: (i, 0)),    # x
            pl.BlockSpec((tb, K * D), lambda i: (i, 0)),   # input_vecs (B, K*D)
            vmem_full, vmem_full,                          # W1, b1 (resident)
            vmem_full, vmem_full,                          # W2, b2
            vmem_full, vmem_full,                          # W3, b3
        ],
        out_specs=(
            pl.BlockSpec((tb, D), lambda i: (i, 0)),
            pl.BlockSpec((tb, W_OUT), lambda i: (i, 0)),
        ),
        compiler_params=pltpu.CompilerParams(
            dimension_semantics=("parallel",)),
    )(x32, iv2, *padded_params)

    weight = weight[:, :K][:, :, None]   # free wrapper-side view -> (B, K, 1)
    return pred, weight


def init_params(key, input_hdim):
    """Deterministic Linear-layer parameters (weights stored as (in, out))."""
    k1, k2, k3 = jax.random.split(key, 3)

    def linear(k, fan_in, fan_out):
        bound = 1.0 / jnp.sqrt(jnp.float32(fan_in))
        kw, kb = jax.random.split(k)
        w = jax.random.uniform(kw, (fan_in, fan_out), jnp.float32, -bound, bound)
        b = jax.random.uniform(kb, (1, fan_out), jnp.float32, -bound, bound)
        return w, b

    w1, b1 = linear(k1, input_hdim, 100)
    w2, b2 = linear(k2, 100, 100)
    w3, b3 = linear(k3, 100, 3)
    return (w1, b1, w2, b2, w3, b3)


if __name__ == "__main__":
    key = jax.random.PRNGKey(0)
    kx, kv, kp = jax.random.split(key, 3)

    B = 8           # batch
    H_IN = 32       # input_hdim
    K = 3           # ensemble members (softmax width from fc3)
    D = 16          # per-member distribution / vector dim

    x = jax.random.normal(kx, (B, H_IN), jnp.float32)
    input_vecs = jax.random.normal(kv, (B, K, D), jnp.float32)
    params = init_params(kp, H_IN)

    padded_params = prepare_params(params)   # hoisted: done once, not per call
    fwd = jax.jit(net_forward)
    pred_dist, weight = fwd(input_vecs, x, padded_params)
    jax.block_until_ready((pred_dist, weight))

    # Reference check in plain JAX (highest-precision matmuls).
    w1, b1, w2, b2, w3, b3 = params
    hp = jax.lax.Precision.HIGHEST
    h = jnp.maximum(jnp.dot(x, w1, precision=hp) + b1, 0.0)
    h = jnp.maximum(jnp.dot(h, w2, precision=hp) + b2, 0.0)
    logits = jnp.dot(h, w3, precision=hp) + b3
    w_ref = jax.nn.softmax(logits, axis=-1)
    pred_ref = jnp.sum(w_ref[:, :, None] * input_vecs, axis=1)

    assert pred_dist.shape == (B, D) and weight.shape == (B, K, 1)
    assert jnp.allclose(pred_dist, pred_ref, atol=2e-3, rtol=2e-3)
    assert jnp.allclose(weight[..., 0], w_ref, atol=2e-3, rtol=2e-3)

    print("KERNEL_OK")
</pallas_src>

<mosaic_0001>
module attributes {stable_mosaic.version = 11 : i64} {
  func.func @_net_kernel(%arg0: i32, %arg1: memref<8x32xf32, #tpu.memory_space<vmem>>, %arg2: memref<8x48xf32, #tpu.memory_space<vmem>>, %arg3: memref<32x128xf32, #tpu.memory_space<vmem>>, %arg4: memref<1x128xf32, #tpu.memory_space<vmem>>, %arg5: memref<128x128xf32, #tpu.memory_space<vmem>>, %arg6: memref<1x128xf32, #tpu.memory_space<vmem>>, %arg7: memref<128x128xf32, #tpu.memory_space<vmem>>, %arg8: memref<1x128xf32, #tpu.memory_space<vmem>>, %arg9: memref<8x16xf32, #tpu.memory_space<vmem>>, %arg10: memref<8x8xf32, #tpu.memory_space<vmem>>) attributes {dimension_semantics = [#tpu.dimension_semantics<parallel>], iteration_bounds = array<i64: 1>, scalar_prefetch = 0 : i64, scratch_operands = 0 : i64, tpu.core_type = #tpu.core_type<tc>, window_params = [{transform_indices = @transform_0, window_bounds = array<i64: 8, 32>}, {transform_indices = @transform_1, window_bounds = array<i64: 8, 48>}, {pipeline_mode = #tpu.pipeline_mode<synchronous>, transform_indices = @transform_2, window_bounds = array<i64: 32, 128>}, {pipeline_mode = #tpu.pipeline_mode<synchronous>, transform_indices = @transform_3, window_bounds = array<i64: 1, 128>}, {pipeline_mode = #tpu.pipeline_mode<synchronous>, transform_indices = @transform_4, window_bounds = array<i64: 128, 128>}, {pipeline_mode = #tpu.pipeline_mode<synchronous>, transform_indices = @transform_5, window_bounds = array<i64: 1, 128>}, {pipeline_mode = #tpu.pipeline_mode<synchronous>, transform_indices = @transform_6, window_bounds = array<i64: 128, 128>}, {pipeline_mode = #tpu.pipeline_mode<synchronous>, transform_indices = @transform_7, window_bounds = array<i64: 1, 128>}, {transform_indices = @transform_8, window_bounds = array<i64: 8, 16>}, {transform_indices = @transform_9, window_bounds = array<i64: 8, 8>}]} {
    %c0 = arith.constant 0 : index
    %c0_0 = arith.constant 0 : index
    %0 = vector.load %arg1[%c0, %c0_0] : memref<8x32xf32, #tpu.memory_space<vmem>>, vector<8x32xf32>
    %c0_1 = arith.constant 0 : index
    %c0_2 = arith.constant 0 : index
    %1 = vector.load %arg3[%c0_1, %c0_2] : memref<32x128xf32, #tpu.memory_space<vmem>>, vector<32x128xf32>
    %cst = arith.constant dense<0.000000e+00> : vector<8x128xf32>
    %2 = tpu.matmul %0, %1, %cst {dimension_numbers = #tpu.dot_dimension_numbers<[1], [0], [0], [1], [0, 0, 1, 1], [], []>} : vector<8x32xf32>, vector<32x128xf32>, vector<8x128xf32> -> vector<8x128xf32>
    %c0_3 = arith.constant 0 : index
    %c0_4 = arith.constant 0 : index
    %3 = vector.load %arg4[%c0_3, %c0_4] : memref<1x128xf32, #tpu.memory_space<vmem>>, vector<1x128xf32>
    %4 = vector.broadcast %3 : vector<1x128xf32> to vector<8x128xf32>
    %5 = arith.addf %2, %4 : vector<8x128xf32>
    %cst_5 = arith.constant 0.000000e+00 : f32
    %6 = vector.broadcast %cst_5 : f32 to vector<8x128xf32>
    %7 = arith.maximumf %5, %6 : vector<8x128xf32>
    %c0_6 = arith.constant 0 : index
    %c0_7 = arith.constant 0 : index
    %8 = vector.load %arg5[%c0_6, %c0_7] : memref<128x128xf32, #tpu.memory_space<vmem>>, vector<128x128xf32>
    %cst_8 = arith.constant dense<0.000000e+00> : vector<8x128xf32>
    %9 = tpu.matmul %7, %8, %cst_8 {dimension_numbers = #tpu.dot_dimension_numbers<[1], [0], [0], [1], [0, 0, 1, 1], [], []>} : vector<8x128xf32>, vector<128x128xf32>, vector<8x128xf32> -> vector<8x128xf32>
    %c0_9 = arith.constant 0 : index
    %c0_10 = arith.constant 0 : index
    %10 = vector.load %arg6[%c0_9, %c0_10] : memref<1x128xf32, #tpu.memory_space<vmem>>, vector<1x128xf32>
    %11 = vector.broadcast %10 : vector<1x128xf32> to vector<8x128xf32>
    %12 = arith.addf %9, %11 : vector<8x128xf32>
    %cst_11 = arith.constant 0.000000e+00 : f32
    %13 = vector.broadcast %cst_11 : f32 to vector<8x128xf32>
    %14 = arith.maximumf %12, %13 : vector<8x128xf32>
    %c0_12 = arith.constant 0 : index
    %c0_13 = arith.constant 0 : index
    %15 = vector.load %arg7[%c0_12, %c0_13] : memref<128x128xf32, #tpu.memory_space<vmem>>, vector<128x128xf32>
    %cst_14 = arith.constant dense<0.000000e+00> : vector<8x128xf32>
    %16 = tpu.matmul %14, %15, %cst_14 {dimension_numbers = #tpu.dot_dimension_numbers<[1], [0], [0], [1], [0, 0, 1, 1], [], []>} : vector<8x128xf32>, vector<128x128xf32>, vector<8x128xf32> -> vector<8x128xf32>
    %c0_15 = arith.constant 0 : index
    %c0_16 = arith.constant 0 : index
    %17 = vector.load %arg8[%c0_15, %c0_16] : memref<1x128xf32, #tpu.memory_space<vmem>>, vector<1x128xf32>
    %18 = vector.broadcast %17 : vector<1x128xf32> to vector<8x128xf32>
    %19 = arith.addf %16, %18 : vector<8x128xf32>
    %cst_17 = arith.constant dense<0xFF800000> : vector<8xf32>
    %20 = vector.multi_reduction <maximumf>, %19, %cst_17 [1] : vector<8x128xf32> to vector<8xf32>
    %21 = vector.shape_cast %20 : vector<8xf32> to vector<8x1xf32>
    %22 = vector.broadcast %21 : vector<8x1xf32> to vector<8x128xf32>
    %23 = arith.subf %19, %22 : vector<8x128xf32>
    %24 = math.exp %23 : vector<8x128xf32>
    %cst_18 = arith.constant dense<0.000000e+00> : vector<8xf32>
    %25 = vector.multi_reduction <add>, %24, %cst_18 [1] : vector<8x128xf32> to vector<8xf32>
    %26 = vector.shape_cast %25 : vector<8xf32> to vector<8x1xf32>
    %27 = vector.broadcast %26 : vector<8x1xf32> to vector<8x128xf32>
    %28 = arith.divf %24, %27 : vector<8x128xf32>
    %c0_19 = arith.constant 0 : index
    %c0_20 = arith.constant 0 : index
    %29 = vector.load %arg2[%c0_19, %c0_20] : memref<8x48xf32, #tpu.memory_space<vmem>>, vector<8x48xf32>
    %30 = vector.extract_strided_slice %28 {offsets = [0, 0], sizes = [8, 1], strides = [1, 1]} : vector<8x128xf32> to vector<8x1xf32>
    %31 = vector.extract_strided_slice %29 {offsets = [0, 0], sizes = [8, 16], strides = [1, 1]} : vector<8x48xf32> to vector<8x16xf32>
    %32 = vector.broadcast %30 : vector<8x1xf32> to vector<8x16xf32>
    %33 = arith.mulf %32, %31 : vector<8x16xf32>
    %34 = vector.extract_strided_slice %28 {offsets = [0, 1], sizes = [8, 1], strides = [1, 1]} : vector<8x128xf32> to vector<8x1xf32>
    %35 = vector.extract_strided_slice %29 {offsets = [0, 16], sizes = [8, 16], strides = [1, 1]} : vector<8x48xf32> to vector<8x16xf32>
    %36 = vector.broadcast %34 : vector<8x1xf32> to vector<8x16xf32>
    %37 = arith.mulf %36, %35 : vector<8x16xf32>
    %38 = arith.addf %33, %37 : vector<8x16xf32>
    %39 = vector.extract_strided_slice %28 {offsets = [0, 2], sizes = [8, 1], strides = [1, 1]} : vector<8x128xf32> to vector<8x1xf32>
    %40 = vector.extract_strided_slice %29 {offsets = [0, 32], sizes = [8, 16], strides = [1, 1]} : vector<8x48xf32> to vector<8x16xf32>
    %41 = vector.broadcast %39 : vector<8x1xf32> to vector<8x16xf32>
    %42 = arith.mulf %41, %40 : vector<8x16xf32>
    %43 = arith.addf %38, %42 : vector<8x16xf32>
    %c0_21 = arith.constant 0 : index
    %c0_22 = arith.constant 0 : index
    %44 = vector.load %arg9[%c0_21, %c0_22] : memref<8x16xf32, #tpu.memory_space<vmem>>, vector<8x16xf32>
    tpu.vector_store %arg9[%c0_21, %c0_22], %43 {strides = array<i32>} : memref<8x16xf32, #tpu.memory_space<vmem>>, vector<8x16xf32>,
    %45 = vector.extract_strided_slice %28 {offsets = [0, 0], sizes = [8, 8], strides = [1, 1]} : vector<8x128xf32> to vector<8x8xf32>
    %c0_23 = arith.constant 0 : index
    %c0_24 = arith.constant 0 : index
    %46 = vector.load %arg10[%c0_23, %c0_24] : memref<8x8xf32, #tpu.memory_space<vmem>>, vector<8x8xf32>
    tpu.vector_store %arg10[%c0_23, %c0_24], %45 {strides = array<i32>} : memref<8x8xf32, #tpu.memory_space<vmem>>, vector<8x8xf32>,
    return
  }
  func.func @transform_0(%arg0: i32) -> (i32, i32) {
    %c0_i32 = arith.constant 0 : i32
    %c0_i32_0 = arith.constant 0 : i32
    return %arg0, %c0_i32 : i32, i32
  }
  func.func @transform_1(%arg0: i32) -> (i32, i32) {
    %c0_i32 = arith.constant 0 : i32
    %c0_i32_0 = arith.constant 0 : i32
    return %arg0, %c0_i32 : i32, i32
  }
  func.func @transform_2(%arg0: i32) -> (i32, i32) {
    %c0_i32 = arith.constant 0 : i32
    %c0_i32_0 = arith.constant 0 : i32
    %c0_i32_1 = arith.constant 0 : i32
    return %c0_i32, %c0_i32_0 : i32, i32
  }
  func.func @transform_3(%arg0: i32) -> (i32, i32) {
    %c0_i32 = arith.constant 0 : i32
    %c0_i32_0 = arith.constant 0 : i32
    %c0_i32_1 = arith.constant 0 : i32
    return %c0_i32, %c0_i32_0 : i32, i32
  }
  func.func @transform_4(%arg0: i32) -> (i32, i32) {
    %c0_i32 = arith.constant 0 : i32
    %c0_i32_0 = arith.constant 0 : i32
    %c0_i32_1 = arith.constant 0 : i32
    return %c0_i32, %c0_i32_0 : i32, i32
  }
  func.func @transform_5(%arg0: i32) -> (i32, i32) {
    %c0_i32 = arith.constant 0 : i32
    %c0_i32_0 = arith.constant 0 : i32
    %c0_i32_1 = arith.constant 0 : i32
    return %c0_i32, %c0_i32_0 : i32, i32
  }
  func.func @transform_6(%arg0: i32) -> (i32, i32) {
    %c0_i32 = arith.constant 0 : i32
    %c0_i32_0 = arith.constant 0 : i32
    %c0_i32_1 = arith.constant 0 : i32
    return %c0_i32, %c0_i32_0 : i32, i32
  }
  func.func @transform_7(%arg0: i32) -> (i32, i32) {
    %c0_i32 = arith.constant 0 : i32
    %c0_i32_0 = arith.constant 0 : i32
    %c0_i32_1 = arith.constant 0 : i32
    return %c0_i32, %c0_i32_0 : i32, i32
  }
  func.func @transform_8(%arg0: i32) -> (i32, i32) {
    %c0_i32 = arith.constant 0 : i32
    %c0_i32_0 = arith.constant 0 : i32
    return %arg0, %c0_i32 : i32, i32
  }
  func.func @transform_9(%arg0: i32) -> (i32, i32) {
    %c0_i32 = arith.constant 0 : i32
    %c0_i32_0 = arith.constant 0 : i32
    return %arg0, %c0_i32 : i32, i32
  }
}

</mosaic_0001>

<bundles_post_ra>
// kernel: net_forward.1
= control target key start
LH: loop header
LB: loop body
LE: loop exit
PB: predicated region body
PF: predicated region fallthrough
CT: control target
= control target key end

     0   :  { %15 = vsyncpa [#allocation3], 0  ;;  %s815_s0 = inlined_call_operand.vmem [shape: f32[8,32], index: 0, kind: input, shape index: {}]   ;;  %s816_s1 = inlined_call_operand.vmem [shape: f32[8,48], index: 1, kind: input, shape index: {}]   ;;  %s817_s2 = inlined_call_operand.vmem [shape: f32[32,128], index: 2, kind: input, shape index: {}]   ;;  %s818_s3 = inlined_call_operand.vmem [shape: f32[1,128], index: 3, kind: input, shape index: {}]   ;;  %s819_s4 = inlined_call_operand.hbm [shape: f32[128,128], index: 4, kind: input, shape index: {}]   ;;  %s820_s5 = inlined_call_operand.vmem [shape: f32[1,128], index: 5, kind: input, shape index: {}]   ;;  %s821_s6 = inlined_call_operand.hbm [shape: f32[128,128], index: 6, kind: input, shape index: {}]   ;;  %s822_s7 = inlined_call_operand.vmem [shape: f32[1,128], index: 7, kind: input, shape index: {}]   ;;  %s823_s8 = inlined_call_operand.hbm [shape: f32[8,16], index: 8, kind: output, shape index: {0}]   ;;  %s824_s9 = inlined_call_operand.vmem [shape: f32[8,8], index: 9, kind: output, shape index: {1}]  }
   0x1   :  { %16 = vsyncpa [#allocation6], 0 }
   0x2   :  { %17 = vsyncpa [#allocation4], 0  ;;  %s665_s30 = smov [#allocation2]   ;;  %s593_s13 = scalar_lea.hbm %s819_s4, 2048 }
   0x3   :  { %s31_s10 = sshll.u32 %s665_s30, 4  ;;  %p594_p0 = scmp.ne.s32.totalorder %s819_s4, %s593_s13  ;;  %s32_s10 = int_to_ptr.vmem [resolvable:$true] %s31_s10 }
   0x4   :  { %p597_p1 = scmp.lt.u32.totalorder %s593_s13, %s819_s4 }
   0x6   :  { %p599_p2 = pnand %p597_p1, %p594_p0 }
   0x8   :  { %602 = shalt.err (!%p599_p2)
}
   0x9   :  { %s603_s18 = scalar_lea.vmem %s32_s10, 2048  ;;  %p608_p4 = scmp.lt.s32.totalorder %s32_s10, %s32_s10 }
   0xa   :  { %p604_p3 = scmp.ne.s32.totalorder %s32_s10, %s603_s18  ;;  %p609_p5 = scmp.lt.s32.totalorder %s603_s18, %s603_s18 }
   0xc   :  { %p610_p6 = por %p609_p5, %p608_p4 }
   0xe   :  { %p611_p7 = pnand %p610_p6, %p604_p3 }
  0x10   :  { %614 = shalt.err (!%p611_p7)
}
  0x11   :  { %s666_s19 = smov 128   ;;  %s667_s20 = smov 8  }
  0x12   :  { %37 = dma.hbm_to_vmem [thread:$0]  %s819_s4, 2048, %s32_s10, [#allocation3], %s666_s19, %s666_s19, %s667_s20  }
  0x13   :  { %s668_s23 = smov [#allocation5]   ;;  %s615_s27 = scalar_lea.hbm %s821_s6, 2048 }
  0x14   :  { %s45_s24 = sshll.u32 %s668_s23, 4  ;;  %p616_p8 = scmp.ne.s32.totalorder %s821_s6, %s615_s27  ;;  %s46_s24 = int_to_ptr.vmem [resolvable:$true] %s45_s24 }
  0x15   :  { %p619_p9 = scmp.lt.u32.totalorder %s615_s27, %s821_s6 }
  0x17   :  { %p621_p10 = pnand %p619_p9, %p616_p8 }
  0x19   :  { %624 = shalt.err (!%p621_p10)
}
  0x1a   :  { %s625_s12 = scalar_lea.vmem %s46_s24, 2048  ;;  %p630_p12 = scmp.lt.s32.totalorder %s46_s24, %s46_s24 }
  0x1b   :  { %p626_p11 = scmp.ne.s32.totalorder %s46_s24, %s625_s12  ;;  %p631_p13 = scmp.lt.s32.totalorder %s625_s12, %s625_s12 }
  0x1d   :  { %p632_p0 = por %p631_p13, %p630_p12 }
  0x1f   :  { %p633_p1 = pnand %p632_p0, %p626_p11 }
  0x21   :  { %636 = shalt.err (!%p633_p1)
}
  0x22   :  { %51 = dma.hbm_to_vmem [thread:$0]  %s821_s6, 2048, %s46_s24, [#allocation6], %s666_s19, %s666_s19, %s667_s20  }
  0x23   :  { %659 = dma.done.wait [#allocation3], 2048  }
  0x24   :  { %660 = vsyncadd [#allocation3], 4294965248 }
  0x25   :  { %661 = dma.done.wait [#allocation6], 2048  }
  0x26   :  { %662 = vsyncadd [#allocation6], 4294965248  ;;  %v669_v0 = vmov 0.0|0.0   ;;  %vm670_vm0 = vmmov 0   ;;  %v671_v1 = vmov 0.0   ;;  %v61_v2 = vld [vmem:[%s817_s2] sm:$0xff] }
  0x27   :  { %518 = vmatprep.subr.bf16.mxu0 %v669_v0  ;;  %445 = vmatprep.mubr.msk.f32.mxu0 %vm670_vm0, %v671_v1  ;;  %v62_v3 = vld [vmem:[%s817_s2 + $0x8] sm:$0xff]  ;;  %v63_v4 = vld [vmem:[%s817_s2 + $0x10] sm:$0xff]  ;;  %v64_v6 = vld [vmem:[%s817_s2 + $0x18] sm:$0xff]  ;;  %vm72_vm1 = vcmask 261120   ;;  %vm372_vm2 = vcmask 64512   ;;  %s675_s27 = smov 112  }
  0x28   :  { %524 = vmatprep.subr.bf16.mxu1 %v669_v0  ;;  %480 = vmatprep.mubr.msk.f32.mxu1 %vm670_vm0, %v671_v1  ;;  %v519_v5 = vpack.c.bf16 %v62_v3, %v61_v2  ;;  %v147_v7 = vld [vmem:[#allocation2] sm:$0xff]  ;;  %v148_v8 = vld [vmem:[#allocation2 + $0x8] sm:$0xff]  ;;  %v149_v9 = vld [vmem:[#allocation2 + $0x10] sm:$0xff]  ;;  %v522_v11 = vpack.c.bf16 %v64_v6, %v63_v4  ;;  %s676_s28 = smov 96   ;;  %vm370_vm3 = vcmask 130048  }
  0x29   :  { %v150_v10 = vld [vmem:[#allocation2 + $0x18] sm:$0xff]  ;;  %v525_v12 = vpack.c.bf16 %v148_v8, %v147_v7  ;;  %v151_v14 = vld [vmem:[#allocation2 + $0x20] sm:$0xff]  ;;  %v152_v15 = vld [vmem:[#allocation2 + $0x28] sm:$0xff] }
  0x2a   :  { %520 = vmatpush3.bf16.msra.mxu0 %v519_v5  ;;  %v528_v13 = vpack.c.bf16 %v150_v10, %v149_v9  ;;  %v60_v16 = vld [vmem:[%s815_s0] sm:$0xff]  ;;  %v531_v17 = vpack.c.bf16 %v152_v15, %v151_v14  ;;  %v153_v18 = vld [vmem:[#allocation2 + $0x30] sm:$0xff]  ;;  %v154_v19 = vld [vmem:[#allocation2 + $0x38] sm:$0xff] }
  0x2b   :  { %521 = vmatprep.subr.bf16.mxu0 %v669_v0  ;;  %526 = vmatpush3.bf16.msra.mxu1 %v525_v12  ;;  %v534_v20 = vpack.c.bf16 %v154_v19, %v153_v18  ;;  %v155_v21 = vld [vmem:[#allocation2 + $0x40] sm:$0xff]  ;;  %v156_v22 = vld [vmem:[#allocation2 + $0x48] sm:$0xff]  ;;  %v157_v24 = vld [vmem:[#allocation2 + $0x50] sm:$0xff]  ;;  %v673_v12 = vmov 0  }
  0x2c   :  { %527 = vmatprep.subr.bf16.mxu1 %v669_v0  ;;  %v537_v23 = vpack.c.bf16 %v156_v22, %v155_v21  ;;  %v158_v25 = vld [vmem:[#allocation2 + $0x58] sm:$0xff]  ;;  %v159_v27 = vld [vmem:[#allocation2 + $0x60] sm:$0xff]  ;;  %v160_v28 = vld [vmem:[#allocation2 + $0x68] sm:$0xff]  ;;  %587 = vset.pattern.permute.xlu0 %v673_v12 }
  0x2d   :  { %v540_v26 = vpack.c.bf16 %v158_v25, %v157_v24  ;;  %v543_v29 = vpack.c.bf16 %v160_v28, %v159_v27  ;;  %v161_v30 = vld [vmem:[#allocation2 + $0x70] sm:$0xff]  ;;  %v162_v31 = vld [vmem:[#allocation2 + $0x78] sm:$0xff]  ;;  %v241_v33 = vld [vmem:[#allocation5] sm:$0xff] }
  0x2e   :  { %523 = vmatpush3.bf16.msra.mxu0 %v522_v11  ;;  %v546_v32 = vpack.c.bf16 %v162_v31, %v161_v30  ;;  %v242_v34 = vld [vmem:[#allocation5 + $0x8] sm:$0xff]  ;;  %v243_v35 = vld [vmem:[#allocation5 + $0x10] sm:$0xff]  ;;  %v244_v37 = vld [vmem:[#allocation5 + $0x18] sm:$0xff]  ;;  %v672_v11 = vmov 1  }
  0x2f   :  { %548 = vmatprep.subr.bf16.mxu0 %v669_v0  ;;  %529 = vmatpush3.bf16.msra.mxu1 %v528_v13  ;;  %v549_v36 = vpack.c.bf16 %v242_v34, %v241_v33  ;;  %v552_v38 = vpack.c.bf16 %v244_v37, %v243_v35  ;;  %v245_v39 = vld [vmem:[#allocation5 + $0x20] sm:$0xff]  ;;  %v246_v40 = vld [vmem:[#allocation5 + $0x28] sm:$0xff]  ;;  %v247_v42 = vld [vmem:[#allocation5 + $0x30] sm:$0xff] }
  0x30   :  { %530 = vmatprep.subr.bf16.mxu1 %v669_v0  ;;  %v555_v41 = vpack.c.bf16 %v246_v40, %v245_v39  ;;  %v248_v43 = vld [vmem:[#allocation5 + $0x38] sm:$0xff]  ;;  %v249_v45 = vld [vmem:[#allocation5 + $0x40] sm:$0xff]  ;;  %v250_v46 = vld [vmem:[#allocation5 + $0x48] sm:$0xff]  ;;  %585 = vset.pattern.permute.xlu1 %v672_v11 }
  0x31   :  { %446 = vmatmul.mubr.msk.f32.vlgmr.msra.gmra.mrb[0].mxu0 %vm72_vm1, %v60_v16  ;;  %v558_v44 = vpack.c.bf16 %v248_v43, %v247_v42  ;;  %v561_v47 = vpack.c.bf16 %v250_v46, %v249_v45  ;;  %v251_v48 = vld [vmem:[#allocation5 + $0x50] sm:$0xff]  ;;  %v252_v49 = vld [vmem:[#allocation5 + $0x58] sm:$0xff]  ;;  %v253_v51 = vld [vmem:[#allocation5 + $0x60] sm:$0xff]  ;;  %v674_v16 = vmov 2  }
  0x32   :  { %515 = vmatprep.mubr.msk.f32.mxu0 %vm670_vm0, %v671_v1  ;;  %550 = vmatpush3.bf16.msra.mxu0 %v549_v36  ;;  %v564_v50 = vpack.c.bf16 %v252_v49, %v251_v48  ;;  %v254_v52 = vld [vmem:[#allocation5 + $0x68] sm:$0xff]  ;;  %v394_v54 = vld [vmem:[%s818_s3] ss:$0 sm:$0xff]  ;;  %v255_v59 = vld [vmem:[#allocation5 + $0x70] sm:$0xff] }
  0x33   :  { %532 = vmatpush3.bf16.msra.mxu1 %v531_v17  ;;  %551 = vmatprep.subr.bf16.mxu0 %v669_v0  ;;  %v567_v53 = vpack.c.bf16 %v254_v52, %v253_v51  ;;  %v256_v60 = vld [vmem:[#allocation5 + $0x78] sm:$0xff]  ;;  %v396_v62 = vld [vmem:[%s820_s5] ss:$0 sm:$0xff] }
  0x34   :  { %533 = vmatprep.subr.bf16.mxu1 %v669_v0  ;;  %v570_v61 = vpack.c.bf16 %v256_v60, %v255_v59  ;;  %v397_v3 = vld [vmem:[%s822_s7] ss:$0 sm:$0xff] }
  0x35   :  { %v343_v17 = vld [vmem:[%s816_s1] sm:$0xff] }
  0x36   :  { %553 = vmatpush3.bf16.msra.mxu0 %v552_v38 }
  0x37   :  { %535 = vmatpush3.bf16.msra.mxu1 %v534_v20  ;;  %554 = vmatprep.subr.bf16.mxu0 %v669_v0 }
  0x38   :  { %536 = vmatprep.subr.bf16.mxu1 %v669_v0 }
  0x3a   :  { %556 = vmatpush3.bf16.msra.mxu0 %v555_v41 }
  0x3b   :  { %538 = vmatpush3.bf16.msra.mxu1 %v537_v23  ;;  %557 = vmatprep.subr.bf16.mxu0 %v669_v0 }
  0x3c   :  { %539 = vmatprep.subr.bf16.mxu1 %v669_v0 }
  0x3e   :  { %559 = vmatpush3.bf16.msra.mxu0 %v558_v44 }
  0x3f   :  { %541 = vmatpush3.bf16.msra.mxu1 %v540_v26  ;;  %560 = vmatprep.subr.bf16.mxu0 %v669_v0 }
  0x40   :  { %542 = vmatprep.subr.bf16.mxu1 %v669_v0 }
  0x42   :  { %562 = vmatpush3.bf16.msra.mxu0 %v561_v47 }
  0x43   :  { %544 = vmatpush3.bf16.msra.mxu1 %v543_v29  ;;  %563 = vmatprep.subr.bf16.mxu0 %v669_v0 }
  0x44   :  { %545 = vmatprep.subr.bf16.mxu1 %v669_v0 }
  0x46   :  { %565 = vmatpush3.bf16.msra.mxu0 %v564_v50 }
  0x47   :  { %547 = vmatpush3.bf16.msra.mxu1 %v546_v32  ;;  %566 = vmatprep.subr.bf16.mxu0 %v669_v0 }
  0x4a   :  { %568 = vmatpush3.bf16.msra.mxu0 %v567_v53 }
  0x4b   :  { %569 = vmatprep.subr.bf16.mxu0 %v669_v0 }
  0x4e   :  { %571 = vmatpush3.bf16.msra.mxu0 %v570_v61 }
 0x104   :  { %v142_v55 = vpop.f32.mrb[0].mxu0 }
 0x105   :  { %v143_v56 = vadd.f32 %v394_v54, %v142_v55  ;;  %v447_v57 = vpop.f32.mrb[1].mxu0 }
 0x107   :  { %v146_v58 = vmax.f32 %v143_v56, 0.0 }
 0x109   :  { %481 = vmatmul.mubr.f32.vlgmr.msra.gmra.mrb[0].mxu1 %v146_v58 }
 0x1dc   :  { %v236_v63 = vpop.f32.mrb[0].mxu1 }
 0x1dd   :  { %v237_v1 = vadd.f32 %v396_v62, %v236_v63  ;;  %v482_v0 = vpop.f32.mrb[1].mxu1 }
 0x1df   :  { %v240_v2 = vmax.f32 %v237_v1, 0.0 }
 0x1e1   :  { %516 = vmatmul.mubr.f32.vlgmr.msra.gmra.mrb[2].mxu0 %v240_v2 }
 0x2b4   :  { %v330_v4 = vpop.f32.mrb[2].mxu0 }
 0x2b5   :  { %v331_v5 = vadd.f32 %v397_v3, %v330_v4  ;;  %v517_v6 = vpop.f32.mrb[3].mxu0 }
 0x2b7   :  { %334 = vmax.xlane.f32.xlu0 %v331_v5 }
 0x344   :  { %v335_v7 = vpop.xlane.xlu0 %334 }
 0x345   :  { %v336_v8 = vsub.f32 %v331_v5, %v335_v7 }
 0x347   :  { %v337_v9 = vmul.f32 1.442695, %v336_v8 }
 0x349   :  { %589 = vpow2.f32 %v337_v9 }
 0x353   :  { %v590_v10 = vpop.eup %589 }
 0x354   :  { %339 = vadd.xlane.f32.xlu0 %v590_v10 }
 0x3e1   :  { %v340_v13 = vpop.xlane.xlu0 %339 }
 0x3e2   :  { %591 = vrcp.f32 %v340_v13 }
 0x3ec   :  { %v592_v14 = vpop.eup %591 }
 0x3ed   :  { %v342_v15 = vmul.f32 %v592_v14, %v590_v10 }
 0x3ef   :  { %346 = vperm.xlu0 %587, %v342_v15   ;;  %373 = vst.msk [vmem:[%s824_s9] sm:$0xff] %vm372_vm2, %v342_v15  ;;  %351 = vperm.xlu1 %585, %v342_v15   ;;  %s677_s9 = smov [#allocation7]  }
 0x3f0   :  { %s380_s29 = sshll.u32 %s677_s9, 4  ;;  %s381_s29 = int_to_ptr.vmem [resolvable:$true] %s380_s29 }
 0x3f1   :  { %s637_s1 = scalar_lea.vmem %s381_s29, 128  ;;  %p642_p3 = scmp.lt.s32.totalorder %s381_s29, %s381_s29 }
 0x3f2   :  { %p638_p2 = scmp.ne.s32.totalorder %s381_s29, %s637_s1  ;;  %p643_p4 = scmp.lt.s32.totalorder %s637_s1, %s637_s1 }
 0x3f3   :  { %586 = vset.pattern.permute.xlu1 %v674_v16  ;;  %588 = vset.pattern.permute.xlu0 %v674_v16 }
 0x3f4   :  { %361 = vperm.xlu1 %586, %v342_v15   ;;  %p644_p5 = por %p643_p4, %p642_p3 }
 0x3f6   :  { %p645_p6 = pnand %p644_p5, %p638_p2 }
 0x46e   :  { %v352_v18 = vpop.permute.xlu1 %351  ;;  %v347_v22 = vpop.permute.xlu0 %346 }
 0x46f   :  { %v354_v19 = vmul.f32 %v352_v18, %v343_v17  ;;  %v349_v24 = vmul.f32 %v347_v22, %v343_v17 }
 0x471   :  { %356 = vrot.lane.b32.xlu1 %v354_v19, %s675_s27 }
 0x473   :  { %v362_v20 = vpop.permute.xlu1 %361 }
 0x474   :  { %v364_v21 = vmul.f32 %v362_v20, %v343_v17 }
 0x476   :  { %366 = vrot.lane.b32.xlu1 %v364_v21, %s676_s28 }
 0x4e3   :  { %v357_v23 = vpop.permute.xlu1 %356 }
 0x4e4   :  { %v359_v25 = vadd.f32 %v357_v23, %v349_v24 }
 0x4e8   :  { %v367_v26 = vpop.permute.xlu1 %366 }
 0x4e9   :  { %v369_v27 = vadd.f32 %v367_v26, %v359_v25 }
 0x4eb   :  { %371 = vst.msk [vmem:[#allocation7] sm:$0xff] %vm370_vm3, %v369_v27 }
 0x4ec   :  { %648 = shalt.err (!%p645_p6)
}
 0x4ed   :  { %s649_s12 = scalar_lea.hbm %s823_s8, 128 }
 0x4ee   :  { %p650_p7 = scmp.ne.s32.totalorder %s823_s8, %s649_s12  ;;  %p653_p8 = scmp.lt.u32.totalorder %s649_s12, %s823_s8 }
 0x4f0   :  { %p655_p9 = pnand %p653_p8, %p650_p7 }
 0x4f2   :  { %658 = shalt.err (!%p655_p9)
}
 0x4f3   :  { %383 = dma.vmem_to_hbm [thread:$0]  %s381_s29, 128, %s823_s8, [#allocation4]  }
 0x4f4   :  { %663 = dma.done.wait [#allocation4], 128  }
 0x4f5   :  { %664 = vsyncadd [#allocation4], 4294967168 }
 0x4f6   :  { %391 = vsyncpa [#allocation3], 1 }
 0x4f7   :  { %392 = vsyncpa [#allocation6], 1 }
 0x4f8   :  { %393 = vsyncpa [#allocation4], 1 }

</bundles_post_ra>
